<compile_context>
chip_gen: v7x
topology: tpu7x:2x2x1
jax: 0.10.0
libtpu: 0.0.40
codegen_flags: <defaults>
</compile_context>

<pallas_src>
import functools

import jax
import jax.numpy as jnp
from jax.experimental import pallas as pl
from jax.experimental.pallas import tpu as pltpu


def _round_up(x, m):
    return ((x + m - 1) // m) * m


def _cdiv(a, b):
    return (a + b - 1) // b


def _fit_tile(dim_al, cap, align):
    """Largest tile <= cap (multiple of `align`, or the full dim), preferring an
    exact divisor of dim_al so that operand needs no padding copy."""
    if dim_al <= cap:
        return dim_al                      # single block, full extent
    cap = max(align, (cap // align) * align)
    if dim_al % cap == 0:
        return cap
    t = cap - align
    while t >= max(align, cap // 2):       # accept at most 2x more blocks
        if dim_al % t == 0:
            return t
        t -= align
    return cap


# Conservative double-buffered tile budget: fits every generation's physical
# VMEM, including v7x (64 MiB) with pipelining headroom.
_VMEM_TILE_BUDGET = 32 * 1024 * 1024


def _choose_tiles(m_al, k_al, n_al, in_bytes, out_bytes, use_scratch, sub):
    def footprint(tm, tk, tn):
        fp = 2 * (tm * tk + tk * tn) * in_bytes + 2 * tm * tn * out_bytes
        if use_scratch:
            fp += tm * tn * 4
        return fp

    if m_al <= 256:
        # Small-batch weight-streaming regime: one M block, big N/K tiles so
        # per-step overhead does not dominate the (dominant) HBM weight read.
        tm = m_al
        tn = _fit_tile(n_al, 2048, 256 if n_al % 256 == 0 else 128)
        tk = _fit_tile(k_al, 1024, 128)
    else:
        # Compute-bound regime: ~512 tiles (256-multiples for the v6e/v7x
        # 256x256 MXU), large K tile to amortize accumulator read-modify-write.
        tm = _fit_tile(m_al, 512, 256 if m_al % 256 == 0 else sub)
        tn = _fit_tile(n_al, 512, 256 if n_al % 256 == 0 else 128)
        tk = _fit_tile(k_al, 512, 128)

    # Safety shrink (rarely triggers with the caps above): K first, then N, M.
    while footprint(tm, tk, tn) > _VMEM_TILE_BUDGET and tk > 128:
        tk = max(128, (tk // 2) // 128 * 128)
    while footprint(tm, tk, tn) > _VMEM_TILE_BUDGET and tn > 128:
        tn = max(128, (tn // 2) // 128 * 128)
    while footprint(tm, tk, tn) > _VMEM_TILE_BUDGET and tm > sub:
        tm = max(sub, (tm // 2) // sub * sub)

    # v7x has 2 TensorCores: make sure the parallel (M, N) grid has >= 2
    # blocks when the problem is big enough to benefit (harmless on v5e/v6e).
    if _cdiv(m_al, tm) * _cdiv(n_al, tn) == 1:
        if n_al >= 256:
            tn = _round_up(_cdiv(n_al, 2), 128)
        elif m_al >= 2 * sub:
            tm = _round_up(_cdiv(m_al, 2), sub)

    return tm, tk, tn


def _make_linear_kernel(nt_layout, use_scratch):
    """Builds the kernel body.

    nt_layout:  weight tile is (tn, tk) (PyTorch (N, K) layout, NT contraction)
                vs (tk, tn) (pre-transposed, plain NN contraction).
    use_scratch: accumulate in an f32 VMEM scratch (needed for non-f32 outputs)
                vs accumulate directly into the resident f32 output block.
    """
    dn = (((1,), (1,)), ((), ())) if nt_layout else (((1,), (0,)), ((), ()))

    if use_scratch:
        def kernel(x_ref, w_ref, b_ref, o_ref, acc_ref):
            k = pl.program_id(2)

            @pl.when(k == 0)
            def _():
                # Bias initializes the accumulator -> no epilogue add.
                acc_ref[...] = jnp.broadcast_to(b_ref[...], acc_ref.shape)

            acc_ref[...] += jax.lax.dot_general(
                x_ref[...], w_ref[...], dimension_numbers=dn,
                preferred_element_type=jnp.float32)

            @pl.when(k == pl.num_programs(2) - 1)
            def _():
                o_ref[...] = acc_ref[...].astype(o_ref.dtype)
    else:
        def kernel(x_ref, w_ref, b_ref, o_ref):
            k = pl.program_id(2)

            @pl.when(k == 0)
            def _():
                o_ref[...] = jnp.broadcast_to(b_ref[...], o_ref.shape)

            # f32 output: accumulate straight into the resident output block.
            o_ref[...] += jax.lax.dot_general(
                x_ref[...], w_ref[...], dimension_numbers=dn,
                preferred_element_type=jnp.float32)

    return kernel


@functools.partial(jax.jit, static_argnames=("tm", "tn", "tk"))
def linear_forward(x, weight, bias=None, *, tm=None, tn=None, tk=None):
    """y = x @ weight.T + bias, matching torch.nn.functional.linear semantics.

    Args:
      x:      (batch_size, in_dim)
      weight: (out_dim, in_dim)   -- PyTorch layout
      bias:   (out_dim,) or None
      tm/tn/tk: optional tile overrides (auto-selected when None).
    Returns:
      y:      (batch_size, out_dim), dtype of x.
    """
    batch_size, in_dim = x.shape
    out_dim, w_in_dim = weight.shape
    if w_in_dim != in_dim:
        raise ValueError("weight must have shape (out_dim, in_dim)")

    out_dtype = x.dtype
    in_bytes = jnp.dtype(x.dtype).itemsize
    out_bytes = jnp.dtype(out_dtype).itemsize
    use_scratch = jnp.dtype(out_dtype) != jnp.dtype(jnp.float32)

    # Dtype-aware sublane rounding: 8 rows f32, 16 bf16, 32 int8/fp8.
    sub = max(8, 32 // in_bytes)
    m_al = _round_up(batch_size, sub)
    k_al = _round_up(in_dim, 128)
    n_al = _round_up(out_dim, 128)

    a_tm, a_tk, a_tn = _choose_tiles(
        m_al, k_al, n_al, in_bytes, out_bytes, use_scratch, sub)
    tm = a_tm if tm is None else min(tm, m_al)
    tk = a_tk if tk is None else min(tk, k_al)
    tn = a_tn if tn is None else min(tn, n_al)

    m_pad = _round_up(m_al, tm)
    k_pad = _round_up(k_al, tk)
    n_pad = _round_up(n_al, tn)
    grid = (m_pad // tm, n_pad // tn, k_pad // tk)

    # Weight layout: keep PyTorch (N, K) when each weight tile is read only
    # once (single M block => no amortization for a wrapper transpose pass);
    # otherwise transpose once in the wrapper (fused with padding) so the
    # kernel never pays a per-step XLU transpose of the weight tile.
    nt_layout = grid[0] == 1

    if (m_pad, k_pad) != (batch_size, in_dim):
        x = jnp.pad(x, ((0, m_pad - batch_size), (0, k_pad - in_dim)))

    if nt_layout:
        w = weight
        if (n_pad, k_pad) != (out_dim, in_dim):
            w = jnp.pad(w, ((0, n_pad - out_dim), (0, k_pad - in_dim)))
        w_spec = pl.BlockSpec((tn, tk), lambda i, j, k: (j, k))
    else:
        w = weight.T
        if (k_pad, n_pad) != (in_dim, out_dim):
            w = jnp.pad(w, ((0, k_pad - in_dim), (0, n_pad - out_dim)))
        w_spec = pl.BlockSpec((tk, tn), lambda i, j, k: (k, j))

    # Bias kept in f32 (it seeds the f32 accumulator). bias=None is allowed.
    if bias is None:
        b2d = jnp.zeros((1, n_pad), dtype=jnp.float32)
    else:
        b2d = bias.reshape(1, out_dim).astype(jnp.float32)
        if n_pad != out_dim:
            b2d = jnp.pad(b2d, ((0, 0), (0, n_pad - out_dim)))

    # Explicit VMEM limit sized to the double-buffered tiles (+ accumulator,
    # + headroom); kept well below v7x's 64 MiB physical VMEM.
    tile_bytes = (2 * (tm * tk + tk * tn) * in_bytes
                  + 2 * tm * tn * out_bytes
                  + (tm * tn * 4 if use_scratch else 0)
                  + 2 * tn * 4)
    vmem_limit = min(max(tile_bytes + tile_bytes // 2 + (2 << 20), 32 << 20),
                     96 << 20)

    flops = 2 * batch_size * in_dim * out_dim
    bytes_accessed = int(x.size * in_bytes + w.size * in_bytes
                         + b2d.size * 4 + m_pad * n_pad * out_bytes)

    kernel = _make_linear_kernel(nt_layout, use_scratch)
    scratch_shapes = [pltpu.VMEM((tm, tn), jnp.float32)] if use_scratch else []

    out_padded = pl.pallas_call(
        kernel,
        out_shape=jax.ShapeDtypeStruct((m_pad, n_pad), out_dtype),
        grid_spec=pltpu.PrefetchScalarGridSpec(
            num_scalar_prefetch=0,
            grid=grid,
            in_specs=[
                pl.BlockSpec((tm, tk), lambda i, j, k: (i, k)),   # x
                w_spec,                                           # weight
                pl.BlockSpec((1, tn), lambda i, j, k: (0, j)),    # bias (f32)
            ],
            out_specs=pl.BlockSpec((tm, tn), lambda i, j, k: (i, j)),
            scratch_shapes=scratch_shapes,
        ),
        compiler_params=pltpu.CompilerParams(
            dimension_semantics=("parallel", "parallel", "arbitrary"),
            vmem_limit_bytes=int(vmem_limit),
        ),
        cost_estimate=pl.CostEstimate(
            flops=flops, transcendentals=0, bytes_accessed=bytes_accessed),
    )(x, w, b2d)

    return out_padded[:batch_size, :out_dim]


if __name__ == "__main__":
    key = jax.random.PRNGKey(0)
    k1, k2, k3, k4, k5, k6, k7, k8, k9, k10 = jax.random.split(key, 10)

    # 1) Shapes implied by the module (batch=2, in_dim=32, out_dim=16);
    #    weight ~ N(0, 0.01), bias = 0, per Linear.init_parameters().
    x = jax.random.normal(k1, (2, 32), dtype=jnp.float32)
    w = 0.01 * jax.random.normal(k2, (16, 32), dtype=jnp.float32)
    b = jnp.zeros((16,), dtype=jnp.float32)
    y = jax.block_until_ready(linear_forward(x, w, b))
    assert y.shape == (2, 16)
    assert jnp.allclose(y, x @ w.T + b, atol=1e-5, rtol=1e-5)

    # 2) Non-128-aligned dims, auto tiles, single-M-block NT (weight-streaming)
    #    path with the megacore N split.
    x2 = jax.random.normal(k3, (260, 384), dtype=jnp.float32)
    w2 = 0.01 * jax.random.normal(k4, (300, 384), dtype=jnp.float32)
    b2 = jax.random.normal(k5, (300,), dtype=jnp.float32)
    y2 = jax.block_until_ready(linear_forward(x2, w2, b2))
    assert y2.shape == (260, 300)
    assert jnp.allclose(y2, x2 @ w2.T + b2, atol=1e-4, rtol=1e-4)

    # 3) Multi-block M (pre-transposed NN weight path) + multi-step K
    #    accumulation directly into the resident f32 output block.
    x3 = jax.random.normal(k6, (300, 256), dtype=jnp.float32)
    w3 = 0.01 * jax.random.normal(k7, (256, 256), dtype=jnp.float32)
    b3 = jax.random.normal(k8, (256,), dtype=jnp.float32)
    y3 = jax.block_until_ready(linear_forward(x3, w3, b3, tm=128, tn=128, tk=128))
    assert y3.shape == (300, 256)
    assert jnp.allclose(y3, x3 @ w3.T + b3, atol=1e-3, rtol=1e-3)

    # 4) bf16 inputs/outputs: f32 VMEM accumulator path, 16-row sublane tiling.
    x4 = jax.random.normal(k9, (2, 512), dtype=jnp.bfloat16)
    w4 = (0.01 * jax.random.normal(k10, (1024, 512), dtype=jnp.float32)
          ).astype(jnp.bfloat16)
    b4 = jnp.zeros((1024,), dtype=jnp.bfloat16)
    y4 = jax.block_until_ready(linear_forward(x4, w4, b4))
    assert y4.shape == (2, 1024)
    ref4 = (x4.astype(jnp.float32) @ w4.astype(jnp.float32).T
            + b4.astype(jnp.float32)).astype(jnp.bfloat16)
    assert jnp.allclose(y4.astype(jnp.float32), ref4.astype(jnp.float32),
                        atol=2e-2, rtol=2e-2)

    print("KERNEL_OK")
</pallas_src>

<mosaic_0001>
module attributes {stable_mosaic.version = 11 : i64} {
  func.func @kernel(%arg0: i32, %arg1: i32, %arg2: i32, %arg3: memref<8x128xf32, #tpu.memory_space<vmem>>, %arg4: memref<128x128xf32, #tpu.memory_space<vmem>>, %arg5: memref<1x128xf32, #tpu.memory_space<vmem>>, %arg6: memref<8x128xf32, #tpu.memory_space<vmem>>) attributes {dimension_semantics = [#tpu.dimension_semantics<parallel>, #tpu.dimension_semantics<parallel>, #tpu.dimension_semantics<arbitrary>], iteration_bounds = array<i64: 1, 1, 1>, scalar_prefetch = 0 : i64, scratch_operands = 0 : i64, tpu.core_type = #tpu.core_type<tc>, window_params = [{transform_indices = @transform_0, window_bounds = array<i64: 8, 128>}, {transform_indices = @transform_1, window_bounds = array<i64: 128, 128>}, {transform_indices = @transform_2, window_bounds = array<i64: 1, 128>}, {transform_indices = @transform_3, window_bounds = array<i64: 8, 128>}]} {
    %c0_i32 = arith.constant 0 : i32
    %0 = arith.cmpi eq, %arg2, %c0_i32 : i32
    %1 = arith.extui %0 : i1 to i32
    %c0_i32_0 = arith.constant 0 : i32
    %2 = arith.cmpi ne, %1, %c0_i32_0 : i32
    scf.if %2 {
      %c0_8 = arith.constant 0 : index
      %c0_9 = arith.constant 0 : index
      %9 = vector.load %arg5[%c0_8, %c0_9] : memref<1x128xf32, #tpu.memory_space<vmem>>, vector<1x128xf32>
      %10 = vector.shape_cast %9 : vector<1x128xf32> to vector<1x128xf32>
      %11 = vector.broadcast %10 : vector<1x128xf32> to vector<8x128xf32>
      %c0_10 = arith.constant 0 : index
      %c0_11 = arith.constant 0 : index
      %12 = vector.load %arg6[%c0_10, %c0_11] : memref<8x128xf32, #tpu.memory_space<vmem>>, vector<8x128xf32>
      tpu.vector_store %arg6[%c0_10, %c0_11], %11 {strides = array<i32>} : memref<8x128xf32, #tpu.memory_space<vmem>>, vector<8x128xf32>,
    } else {
    }
    %c0 = arith.constant 0 : index
    %c0_1 = arith.constant 0 : index
    %3 = vector.load %arg6[%c0, %c0_1] : memref<8x128xf32, #tpu.memory_space<vmem>>, vector<8x128xf32>
    %c0_2 = arith.constant 0 : index
    %c0_3 = arith.constant 0 : index
    %4 = vector.load %arg3[%c0_2, %c0_3] : memref<8x128xf32, #tpu.memory_space<vmem>>, vector<8x128xf32>
    %c0_4 = arith.constant 0 : index
    %c0_5 = arith.constant 0 : index
    %5 = vector.load %arg4[%c0_4, %c0_5] : memref<128x128xf32, #tpu.memory_space<vmem>>, vector<128x128xf32>
    %cst = arith.constant dense<0.000000e+00> : vector<8x128xf32>
    %6 = tpu.matmul %4, %5, %cst {dimension_numbers = #tpu.dot_dimension_numbers<[1], [1], [0], [0], [0, 0, 1, 0], [], []>} : vector<8x128xf32>, vector<128x128xf32>, vector<8x128xf32> -> vector<8x128xf32>
    %7 = arith.addf %3, %6 : vector<8x128xf32>
    %c0_6 = arith.constant 0 : index
    %c0_7 = arith.constant 0 : index
    %8 = vector.load %arg6[%c0_6, %c0_7] : memref<8x128xf32, #tpu.memory_space<vmem>>, vector<8x128xf32>
    tpu.vector_store %arg6[%c0_6, %c0_7], %7 {strides = array<i32>} : memref<8x128xf32, #tpu.memory_space<vmem>>, vector<8x128xf32>,
    return
  }
  func.func @transform_0(%arg0: i32, %arg1: i32, %arg2: i32) -> (i32, i32) {
    %c0_i32 = arith.constant 0 : i32
    return %arg0, %arg2 : i32, i32
  }
  func.func @transform_1(%arg0: i32, %arg1: i32, %arg2: i32) -> (i32, i32) {
    %c0_i32 = arith.constant 0 : i32
    return %arg1, %arg2 : i32, i32
  }
  func.func @transform_2(%arg0: i32, %arg1: i32, %arg2: i32) -> (i32, i32) {
    %c0_i32 = arith.constant 0 : i32
    %c0_i32_0 = arith.constant 0 : i32
    return %c0_i32, %arg1 : i32, i32
  }
  func.func @transform_3(%arg0: i32, %arg1: i32, %arg2: i32) -> (i32, i32) {
    %c0_i32 = arith.constant 0 : i32
    return %arg0, %arg1 : i32, i32
  }
}

</mosaic_0001>

<bundles_post_ra>
// kernel: linear_forward.1
= control target key start
LH: loop header
LB: loop body
LE: loop exit
PB: predicated region body
PF: predicated region fallthrough
CT: control target
= control target key end

     0   :  { %v200_v0 = vmov 0.0|0.0   ;;  %vm201_vm0 = vmmov 0   ;;  %v202_v3 = vmov 0.0   ;;  %s280_s1 = inlined_call_operand.vmem [shape: f32[128,128], index: 1, kind: input, shape index: {}]   ;;  %s281_s0 = inlined_call_operand.vmem [shape: f32[8,128], index: 0, kind: input, shape index: {}]   ;;  %s282_s2 = inlined_call_operand.vmem [shape: f32[1,128], index: 2, kind: input, shape index: {}]   ;;  %s283_s3 = inlined_call_operand.vmem [shape: f32[8,128], index: 3, kind: output, shape index: {}]  }
   0x1   :  { %173 = vmatprep.subr.bf16.mxu0 %v200_v0  ;;  %v28_v1 = vld [vmem:[%s280_s1] sm:$0xff]  ;;  %v29_v2 = vld [vmem:[%s280_s1 + $0x8] sm:$0xff]  ;;  %170 = vmatprep.mubr.msk.f32.mxu0 %vm201_vm0, %v202_v3  ;;  %v30_v5 = vld [vmem:[%s280_s1 + $0x10] sm:$0xff] }
   0x2   :  { %v174_v4 = vpack.c.bf16 %v29_v2, %v28_v1  ;;  %v31_v6 = vld [vmem:[%s280_s1 + $0x18] sm:$0xff]  ;;  %v32_v8 = vld [vmem:[%s280_s1 + $0x20] sm:$0xff]  ;;  %v33_v9 = vld [vmem:[%s280_s1 + $0x28] sm:$0xff] }
   0x3   :  { %v177_v7 = vpack.c.bf16 %v31_v6, %v30_v5  ;;  %v180_v10 = vpack.c.bf16 %v33_v9, %v32_v8  ;;  %v34_v11 = vld [vmem:[%s280_s1 + $0x30] sm:$0xff]  ;;  %v35_v12 = vld [vmem:[%s280_s1 + $0x38] sm:$0xff]  ;;  %v36_v14 = vld [vmem:[%s280_s1 + $0x40] sm:$0xff] }
   0x4   :  { %175 = vmatpush3.bf16.xpose.msra.mxu0 %v174_v4  ;;  %v183_v13 = vpack.c.bf16 %v35_v12, %v34_v11  ;;  %v37_v15 = vld [vmem:[%s280_s1 + $0x48] sm:$0xff]  ;;  %v38_v17 = vld [vmem:[%s280_s1 + $0x50] sm:$0xff]  ;;  %v39_v18 = vld [vmem:[%s280_s1 + $0x58] sm:$0xff] }
   0x5   :  { %176 = vmatprep.subr.bf16.mxu0 %v200_v0  ;;  %v186_v16 = vpack.c.bf16 %v37_v15, %v36_v14  ;;  %v189_v19 = vpack.c.bf16 %v39_v18, %v38_v17  ;;  %v40_v20 = vld [vmem:[%s280_s1 + $0x60] sm:$0xff]  ;;  %v41_v21 = vld [vmem:[%s280_s1 + $0x68] sm:$0xff]  ;;  %v42_v23 = vld [vmem:[%s280_s1 + $0x70] sm:$0xff] }
   0x6   :  { %v192_v22 = vpack.c.bf16 %v41_v21, %v40_v20  ;;  %v43_v24 = vld [vmem:[%s280_s1 + $0x78] sm:$0xff]  ;;  %v27_v26 = vld [vmem:[%s281_s0] sm:$0xff] }
   0x7   :  { %v195_v25 = vpack.c.bf16 %v43_v24, %v42_v23  ;;  %v120_v27 = vld [vmem:[%s282_s2] ss:$0 sm:$0xff] }
   0xc   :  { %178 = vmatpush3.bf16.xpose.msra.mxu0 %v177_v7 }
   0xd   :  { %179 = vmatprep.subr.bf16.mxu0 %v200_v0 }
  0x14   :  { %181 = vmatpush3.bf16.xpose.msra.mxu0 %v180_v10 }
  0x15   :  { %182 = vmatprep.subr.bf16.mxu0 %v200_v0 }
  0x1c   :  { %184 = vmatpush3.bf16.xpose.msra.mxu0 %v183_v13 }
  0x1d   :  { %185 = vmatprep.subr.bf16.mxu0 %v200_v0 }
  0x24   :  { %187 = vmatpush3.bf16.xpose.msra.mxu0 %v186_v16 }
  0x25   :  { %188 = vmatprep.subr.bf16.mxu0 %v200_v0 }
  0x2c   :  { %190 = vmatpush3.bf16.xpose.msra.mxu0 %v189_v19 }
  0x2d   :  { %191 = vmatprep.subr.bf16.mxu0 %v200_v0 }
  0x34   :  { %193 = vmatpush3.bf16.xpose.msra.mxu0 %v192_v22 }
  0x35   :  { %194 = vmatprep.subr.bf16.mxu0 %v200_v0 }
  0x3c   :  { %196 = vmatpush3.bf16.xpose.msra.mxu0 %v195_v25 }
  0x43   :  { %171 = vmatmul.mubr.f32.vlgmr.msra.gmra.mrb[0].mxu0 %v27_v26 }
 0x116   :  { %v110_v28 = vpop.f32.mrb[0].mxu0 }
 0x117   :  { %v114_v29 = vadd.f32 %v120_v27, %v110_v28  ;;  %v172_v30 = vpop.f32.mrb[1].mxu0 }
 0x119   :  { %115 = vst [vmem:[%s283_s3] sm:$0xff] %v114_v29 }

</bundles_post_ra>
